<compile_context>
chip_gen: v5e
topology: v5e:2x2
jax: 0.10.0
libtpu: 0.0.40
codegen_flags: <defaults>
</compile_context>

<pallas_src>
import functools
import math

import jax
import jax.numpy as jnp
from jax.experimental import pallas as pl
from jax.experimental.pallas import tpu as pltpu


def _round_up(v, m):
    return ((v + m - 1) // m) * m


def _mpconv1d_kernel(*refs, k, dilation, padding, lw, rw, lt, x_len,
                     mask_tail, fold):
    # refs: w, x_tile, [left halo], [right halo], out
    idx = 0
    w_ref = refs[idx]; idx += 1
    x_ref = refs[idx]; idx += 1
    left_ref = None
    right_ref = None
    if lw > 0:
        left_ref = refs[idx]; idx += 1
    if rw > 0:
        right_ref = refs[idx]; idx += 1
    o_ref = refs[idx]

    x_blk = x_ref[0]                                        # (C_in, lt)

    if mask_tail:
        # Zero the columns of this tile that lie past the real end of x (the
        # ragged last block); together with the zero-filled halos this
        # implements the conv's zero padding without ever padding x in HBM.
        j = pl.program_id(1)
        col = jax.lax.broadcasted_iota(jnp.int32, x_blk.shape, 1)
        x_blk = jnp.where(col < (x_len - j * lt), x_blk, jnp.zeros_like(x_blk))

    # Contiguous, lane-aligned input window [left | tile | right]; window
    # column w corresponds to x column j*lt - lw + w.
    pieces = []
    if left_ref is not None:
        pieces.append(left_ref[0, 0])                       # (C_in, lw)
    pieces.append(x_blk)
    if right_ref is not None:
        pieces.append(right_ref[0, 0])                      # (C_in, rw)
    win = pieces[0] if len(pieces) == 1 else jnp.concatenate(pieces, axis=1)
    l_win = lw + lt + rw

    def tap(t):
        # Output column c of tap t reads window column (lw - padding + t*d + c).
        s = lw - padding + t * dilation
        if s == 0:
            return win[:, :lt]
        # Lane rotation on the XLU; wrapped-around columns land past lt and are
        # dropped by the (aligned) slice.
        return pltpu.roll(win, l_win - s, 1)[:, :lt]

    prec = (jax.lax.Precision.HIGHEST
            if w_ref.dtype == jnp.float32 else jax.lax.Precision.DEFAULT)

    if fold:
        # One MXU contraction over K*C_in (row order matches w_folded).
        xs = tap(0) if k == 1 else jnp.concatenate(
            [tap(t) for t in range(k)], axis=0)              # (K*C_in, lt)
        out = jnp.dot(w_ref[...], xs,
                      preferred_element_type=jnp.float32, precision=prec)
    else:
        # K separate MXU pushes accumulating in f32 (no sublane concat).
        out = jnp.dot(w_ref[0], tap(0),
                      preferred_element_type=jnp.float32, precision=prec)
        for t in range(1, k):
            out = out + jnp.dot(w_ref[t], tap(t),
                                preferred_element_type=jnp.float32,
                                precision=prec)

    o_ref[0] = out.astype(o_ref.dtype)


def _take_cols(x, start, width):
    """x[:, :, start:start+width] with zero fill outside [0, L); static ints."""
    n, c, L = x.shape
    lo, hi = max(start, 0), min(start + width, L)
    if hi <= lo:
        return jnp.zeros((n, c, width), x.dtype)
    seg = jax.lax.slice_in_dim(x, lo, hi, axis=2)
    padl, padr = lo - start, (start + width) - hi
    if padl or padr:
        seg = jnp.pad(seg, ((0, 0), (0, 0), (padl, padr)))
    return seg


def mp_conv1d(x, weight, gain=1.0, *, dilation=1, stride=1, groups=1,
              padding=0, eps=1e-8, l_tile=4096):
    """Forward pass of MPConv1d (eval mode).

    x:      (N, C_in, L)
    weight: (C_out, C_in, K)  raw (un-normalized) parameter
    returns (N, C_out, L_out) per the PyTorch conv1d formula.
    """
    # TODO(synk): stride > 1 and groups > 1 are not implemented in this kernel.
    assert stride == 1 and groups == 1

    n, c_in, L = x.shape
    c_out, c_in_w, k = weight.shape
    assert c_in_w == c_in

    halo = dilation * (k - 1)
    l_out = L + 2 * padding - halo
    assert l_out > 0
    er = max(halo - padding, 0)           # columns needed right of each tile

    # ---- weight normalization (PyTorch `normalize` + gain), done ONCE -------
    fan_in = c_in * k
    w32 = weight.astype(jnp.float32)
    norm = jnp.sqrt(jnp.sum(w32 * w32, axis=(1, 2), keepdims=True))
    w32 = w32 / (eps + norm * (1.0 / math.sqrt(fan_in)))
    w32 = w32 * (gain / math.sqrt(fan_in))

    itemsize = jnp.dtype(x.dtype).itemsize
    pack = 32 // itemsize                 # sublane packing: 8 f32 / 16 bf16
    # Fold K taps into one (C_out, K*C_in) contraction only when the stacked
    # operand is small and lands on sublane pack boundaries; otherwise use K
    # separate dots accumulating in f32.
    fold = (k == 1) or (k * c_in <= 256 and c_in % pack == 0)

    if fold:
        # (C_out, C_in, K) -> (C_out, K, C_in) -> (C_out, K*C_in), tap-major.
        w_kernel = jnp.transpose(w32, (0, 2, 1)).reshape(c_out, k * c_in)
        w_spec = pl.BlockSpec((c_out, k * c_in), lambda b, j: (0, 0))
    else:
        w_kernel = jnp.transpose(w32, (2, 0, 1))             # (K, C_out, C_in)
        w_spec = pl.BlockSpec((k, c_out, c_in), lambda b, j: (0, 0, 0))
    w_kernel = w_kernel.astype(x.dtype)                      # like w.to(x.dtype)

    # ---- L tiling: lane-dense 128-multiples, VMEM-capped, v7x-aware ---------
    budget = 24 * 1024 * 1024                                # stream budget
    lt_cap = budget // max(1, 3 * (c_in + c_out) * itemsize)
    lt = min(l_tile, lt_cap, _round_up(l_out, 128))
    if L >= 128:
        lt = min(lt, (L // 128) * 128)    # keep the x block inside the array
    lt = max(128, (lt // 128) * 128)
    num_tiles = pl.cdiv(l_out, lt)
    if n * num_tiles < 2 and l_out > 128:
        # Keep >=2 grid steps so both v7x TensorCores get work.
        lt = max(128, _round_up(pl.cdiv(l_out, 2), 128))
        num_tiles = pl.cdiv(l_out, lt)
    mask_tail = num_tiles * lt > L

    # Lane-aligned halo widths (0 when not needed -> no halo DMA at all).
    lw = _round_up(padding, 128) if padding > 0 else 0
    rw = _round_up(er, 128) if er > 0 else 0

    operands = [w_kernel, x]
    in_specs = [
        w_spec,                                              # resident weight
        pl.BlockSpec((1, c_in, lt), lambda b, j: (b, 0, j)),
        # TODO(synk): pipeline_mode=pl.Buffered(3) on the x spec is worth a
        # sweep for very small channel counts (costs c_in*lt*itemsize of VMEM).
    ]
    if lw > 0:
        # Left halo of tile j: x columns [j*lt - lw, j*lt), zero-filled < 0.
        left = jnp.stack([_take_cols(x, j * lt - lw, lw)
                          for j in range(num_tiles)], axis=1)   # (N,T,C_in,lw)
        operands.append(left)
        in_specs.append(pl.BlockSpec((1, 1, c_in, lw),
                                     lambda b, j: (b, j, 0, 0)))
    if rw > 0:
        # Right halo of tile j: x columns [(j+1)*lt, (j+1)*lt + rw), zero >= L.
        right = jnp.stack([_take_cols(x, (j + 1) * lt, rw)
                           for j in range(num_tiles)], axis=1)  # (N,T,C_in,rw)
        operands.append(right)
        in_specs.append(pl.BlockSpec((1, 1, c_in, rw),
                                     lambda b, j: (b, j, 0, 0)))

    kernel = functools.partial(
        _mpconv1d_kernel, k=k, dilation=dilation, padding=padding,
        lw=lw, rw=rw, lt=lt, x_len=L, mask_tail=mask_tail, fold=fold)

    # VMEM: double-buffered streams + weight + in-kernel temps, with headroom;
    # capped at 48 MiB so it also fits v7x's 64 MiB physical VMEM.
    need = ((2 * (c_in + c_out) * lt + 2 * c_in * (lw + rw)) * itemsize
            + c_out * k * c_in * itemsize
            + (k + 1) * c_in * (lt + lw + rw) * itemsize
            + c_out * lt * 4)
    vmem_limit = int(min(max(need + (16 << 20), 32 << 20), 48 << 20))

    return pl.pallas_call(
        kernel,
        out_shape=jax.ShapeDtypeStruct((n, c_out, l_out), x.dtype),
        grid=(n, num_tiles),
        in_specs=in_specs,
        out_specs=pl.BlockSpec((1, c_out, lt), lambda b, j: (b, 0, j)),
        compiler_params=pltpu.CompilerParams(
            dimension_semantics=("parallel", "parallel"),
            vmem_limit_bytes=vmem_limit,
        ),
    )(*operands)


def _reference(x, weight, gain=1.0, *, dilation=1, padding=0, eps=1e-8):
    """Pure-JAX reference matching the PyTorch forward (eval mode)."""
    w = weight.astype(jnp.float32)
    fan_in = w.shape[1] * w.shape[2]
    norm = jnp.sqrt(jnp.sum(w * w, axis=(1, 2), keepdims=True))
    w = w / (eps + norm / math.sqrt(fan_in))
    w = w * (gain / math.sqrt(fan_in))
    w = w.astype(x.dtype)
    out = jax.lax.conv_general_dilated(
        x, w,
        window_strides=(1,),
        padding=[(padding, padding)],
        rhs_dilation=(dilation,),
        dimension_numbers=("NCH", "OIH", "NCH"),
        preferred_element_type=jnp.float32,
        precision=jax.lax.Precision.HIGHEST,
    )
    return out.astype(x.dtype)


if __name__ == "__main__":
    key = jax.random.PRNGKey(0)
    k_w, k_x, k_w2, k_x2 = jax.random.split(key, 4)

    batch, in_ch, out_ch, length, ksize = 2, 8, 16, 384, 3
    weight = jax.random.normal(k_w, (out_ch, in_ch, ksize), dtype=jnp.float32)
    x = jax.random.normal(k_x, (batch, in_ch, length), dtype=jnp.float32)

    # Case 1: "same" conv (pad=1, dil=1); single 384-lane tile per batch row.
    out = mp_conv1d(x, weight, gain=1.0, dilation=1, padding=1)
    out = jax.block_until_ready(out)
    ref = _reference(x, weight, gain=1.0, dilation=1, padding=1)
    assert out.shape == ref.shape == (batch, out_ch, length)
    assert jnp.allclose(out, ref, rtol=1e-2, atol=1e-2), (
        float(jnp.max(jnp.abs(out - ref))))

    # Case 2: dilated conv (pad=2, dil=2); 3 tiles of 128 -> multi-tile halos.
    out2 = mp_conv1d(x, weight, gain=1.5, dilation=2, padding=2, l_tile=128)
    out2 = jax.block_until_ready(out2)
    ref2 = _reference(x, weight, gain=1.5, dilation=2, padding=2)
    assert out2.shape == ref2.shape == (batch, out_ch, length)
    assert jnp.allclose(out2, ref2, rtol=1e-2, atol=1e-2), (
        float(jnp.max(jnp.abs(out2 - ref2))))

    # Case 3: bf16 + ragged length (300 not a multiple of 128) -> exercises the
    # in-kernel tail mask, the partial output block, and the per-tap dot path.
    xb = jax.random.normal(k_x2, (batch, in_ch, 300), dtype=jnp.bfloat16)
    out3 = mp_conv1d(xb, weight, gain=1.0, dilation=1, padding=1, l_tile=128)
    out3 = jax.block_until_ready(out3)
    ref3 = _reference(xb, weight, gain=1.0, dilation=1, padding=1)
    assert out3.shape == ref3.shape == (batch, out_ch, 300)
    assert jnp.allclose(out3.astype(jnp.float32), ref3.astype(jnp.float32),
                        rtol=5e-2, atol=5e-2), (
        float(jnp.max(jnp.abs(out3.astype(jnp.float32)
                              - ref3.astype(jnp.float32)))))

    # Case 4: pointwise conv (k=1, pad=0) -> fast path with no halo inputs.
    weight1 = jax.random.normal(k_w2, (out_ch, in_ch, 1), dtype=jnp.float32)
    x4 = jax.random.normal(k_x, (batch, in_ch, 256), dtype=jnp.float32)
    out4 = mp_conv1d(x4, weight1, gain=0.7, dilation=1, padding=0)
    out4 = jax.block_until_ready(out4)
    ref4 = _reference(x4, weight1, gain=0.7, dilation=1, padding=0)
    assert out4.shape == ref4.shape == (batch, out_ch, 256)
    assert jnp.allclose(out4, ref4, rtol=1e-2, atol=1e-2), (
        float(jnp.max(jnp.abs(out4 - ref4))))

    print("KERNEL_OK")
</pallas_src>

<mosaic_0001>
module attributes {stable_mosaic.version = 11 : i64} {
  func.func @_mpconv1d_kernel(%arg0: i32, %arg1: i32, %arg2: memref<16x24xf32, #tpu.memory_space<vmem>>, %arg3: memref<1x8x384xf32, #tpu.memory_space<vmem>>, %arg4: memref<1x1x8x128xf32, #tpu.memory_space<vmem>>, %arg5: memref<1x1x8x128xf32, #tpu.memory_space<vmem>>, %arg6: memref<1x16x384xf32, #tpu.memory_space<vmem>>) attributes {dimension_semantics = [#tpu.dimension_semantics<parallel>, #tpu.dimension_semantics<parallel>], iteration_bounds = array<i64: 2, 1>, scalar_prefetch = 0 : i64, scratch_operands = 0 : i64, tpu.core_type = #tpu.core_type<tc>, window_params = [{pipeline_mode = #tpu.pipeline_mode<synchronous>, transform_indices = @transform_0, window_bounds = array<i64: 16, 24>}, {transform_indices = @transform_1, window_bounds = array<i64: 1, 8, 384>}, {transform_indices = @transform_2, window_bounds = array<i64: 1, 1, 8, 128>}, {transform_indices = @transform_3, window_bounds = array<i64: 1, 1, 8, 128>}, {transform_indices = @transform_4, window_bounds = array<i64: 1, 16, 384>}]} {
    %c0 = arith.constant 0 : index
    %c0_0 = arith.constant 0 : index
    %c0_1 = arith.constant 0 : index
    %0 = vector.load %arg3[%c0, %c0_0, %c0_1] : memref<1x8x384xf32, #tpu.memory_space<vmem>>, vector<1x8x384xf32>
    %1 = vector.shape_cast %0 : vector<1x8x384xf32> to vector<8x384xf32>
    %c0_2 = arith.constant 0 : index
    %c0_3 = arith.constant 0 : index
    %c0_4 = arith.constant 0 : index
    %c0_5 = arith.constant 0 : index
    %2 = vector.load %arg4[%c0_2, %c0_3, %c0_4, %c0_5] : memref<1x1x8x128xf32, #tpu.memory_space<vmem>>, vector<1x1x8x128xf32>
    %3 = vector.shape_cast %2 : vector<1x1x8x128xf32> to vector<8x128xf32>
    %c0_6 = arith.constant 0 : index
    %c0_7 = arith.constant 0 : index
    %c0_8 = arith.constant 0 : index
    %c0_9 = arith.constant 0 : index
    %4 = vector.load %arg5[%c0_6, %c0_7, %c0_8, %c0_9] : memref<1x1x8x128xf32, #tpu.memory_space<vmem>>, vector<1x1x8x128xf32>
    %5 = vector.shape_cast %4 : vector<1x1x8x128xf32> to vector<8x128xf32>
    %6 = tpu.concatenate %3, %1, %5 in 1 : vector<8x128xf32>, vector<8x384xf32>, vector<8x128xf32> -> vector<8x640xf32>
    %c513_i32 = arith.constant 513 : i32
    %7 = tpu.dynamic_rotate %6 by %c513_i32 dim 1 : vector<8x640xf32>, i32 -> vector<8x640xf32>
    %8 = vector.extract_strided_slice %7 {offsets = [0, 0], sizes = [8, 384], strides = [1, 1]} : vector<8x640xf32> to vector<8x384xf32>
    %c512_i32 = arith.constant 512 : i32
    %9 = tpu.dynamic_rotate %6 by %c512_i32 dim 1 : vector<8x640xf32>, i32 -> vector<8x640xf32>
    %10 = vector.extract_strided_slice %9 {offsets = [0, 0], sizes = [8, 384], strides = [1, 1]} : vector<8x640xf32> to vector<8x384xf32>
    %c511_i32 = arith.constant 511 : i32
    %11 = tpu.dynamic_rotate %6 by %c511_i32 dim 1 : vector<8x640xf32>, i32 -> vector<8x640xf32>
    %12 = vector.extract_strided_slice %11 {offsets = [0, 0], sizes = [8, 384], strides = [1, 1]} : vector<8x640xf32> to vector<8x384xf32>
    %13 = tpu.concatenate %8, %10, %12 in 0 : vector<8x384xf32>, vector<8x384xf32>, vector<8x384xf32> -> vector<24x384xf32>
    %c0_10 = arith.constant 0 : index
    %c0_11 = arith.constant 0 : index
    %14 = vector.load %arg2[%c0_10, %c0_11] : memref<16x24xf32, #tpu.memory_space<vmem>>, vector<16x24xf32>
    %cst = arith.constant dense<0.000000e+00> : vector<16x384xf32>
    %15 = tpu.matmul %14, %13, %cst {dimension_numbers = #tpu.dot_dimension_numbers<[1], [0], [0], [1], [0, 0, 1, 1], [], []>, precision = #tpu.contract_precision<fp32>} : vector<16x24xf32>, vector<24x384xf32>, vector<16x384xf32> -> vector<16x384xf32>
    %c0_12 = arith.constant 0 : index
    %c0_13 = arith.constant 0 : index
    %c0_14 = arith.constant 0 : index
    %16 = vector.load %arg6[%c0_12, %c0_13, %c0_14] : memref<1x16x384xf32, #tpu.memory_space<vmem>>, vector<1x16x384xf32>
    %17 = vector.shape_cast %16 : vector<1x16x384xf32> to vector<16x384xf32>
    %18 = vector.shape_cast %15 : vector<16x384xf32> to vector<1x16x384xf32>
    tpu.vector_store %arg6[%c0_12, %c0_13, %c0_14], %18 {strides = array<i32>} : memref<1x16x384xf32, #tpu.memory_space<vmem>>, vector<1x16x384xf32>,
    return
  }
  func.func @transform_0(%arg0: i32, %arg1: i32) -> (i32, i32) {
    %c0_i32 = arith.constant 0 : i32
    %c0_i32_0 = arith.constant 0 : i32
    %c0_i32_1 = arith.constant 0 : i32
    return %c0_i32, %c0_i32_0 : i32, i32
  }
  func.func @transform_1(%arg0: i32, %arg1: i32) -> (i32, i32, i32) {
    %c0_i32 = arith.constant 0 : i32
    %c0_i32_0 = arith.constant 0 : i32
    return %arg0, %c0_i32, %arg1 : i32, i32, i32
  }
  func.func @transform_2(%arg0: i32, %arg1: i32) -> (i32, i32, i32, i32) {
    %c0_i32 = arith.constant 0 : i32
    %c0_i32_0 = arith.constant 0 : i32
    %c0_i32_1 = arith.constant 0 : i32
    return %arg0, %arg1, %c0_i32, %c0_i32_0 : i32, i32, i32, i32
  }
  func.func @transform_3(%arg0: i32, %arg1: i32) -> (i32, i32, i32, i32) {
    %c0_i32 = arith.constant 0 : i32
    %c0_i32_0 = arith.constant 0 : i32
    %c0_i32_1 = arith.constant 0 : i32
    return %arg0, %arg1, %c0_i32, %c0_i32_0 : i32, i32, i32, i32
  }
  func.func @transform_4(%arg0: i32, %arg1: i32) -> (i32, i32, i32) {
    %c0_i32 = arith.constant 0 : i32
    %c0_i32_0 = arith.constant 0 : i32
    return %arg0, %c0_i32, %arg1 : i32, i32, i32
  }
}

</mosaic_0001>

<bundles_post_ra>
// kernel: tpu_custom_call.1
= control target key start
LH: loop header
LB: loop body
LE: loop exit
PB: predicated region body
PF: predicated region fallthrough
CT: control target
= control target key end

     0   :  { %s1840_s0 = inlined_call_operand.hbm [shape: f32[16,24], index: 0, kind: input, shape index: {}]   ;;  %s1841_s1 = inlined_call_operand.hbm [shape: f32[2,8,384], index: 1, kind: input, shape index: {}]   ;;  %s1842_s2 = inlined_call_operand.hbm [shape: f32[2,1,8,128], index: 2, kind: input, shape index: {}]   ;;  %s1843_s3 = inlined_call_operand.hbm [shape: f32[2,1,8,128], index: 3, kind: input, shape index: {}]   ;;  %s1844_s4 = inlined_call_operand.hbm [shape: f32[2,16,384], index: 4, kind: output, shape index: {}]  }
   0x1   :  { %1850 = sst [smem:[#allocation20_spill]] %s1840_s0 }
   0x2   :  { %1851 = sst [smem:[#allocation21_spill]] %s1841_s1 }
   0x3   :  { %9 = vsyncpa [#allocation3], 0 }
   0x4   :  { %10 = vsyncpa [#allocation6], 0 }
   0x5   :  { %12 = vsyncpa [#allocation6 + $0x1], 0 }
   0x6   :  { %13 = vsyncpa [#allocation9], 0 }
   0x7   :  { %15 = vsyncpa [#allocation9 + $0x1], 0 }
   0x8   :  { %16 = vsyncpa [#allocation4], 0 }
   0x9   :  { %18 = vsyncpa [#allocation4 + $0x1], 0  ;;  %s1512_s15 = smov 0   ;;  %s1514_s16 = smov 0  }
   0xa   :  { %s1516_s17 = smov 0   ;;  %s1518_s18 = smov 0  }
   0xb   :  { %s1520_s19 = smov 0   ;;  %s1522_s20 = smov 0  }
   0xc LB: > { %1852 = sst [smem:[#allocation15_spill]] %s1466_s17  ;;  %s1543_s21 = sadd.s32 4294967295, %s1478_s20   ;;  %s1478_s20 = sphi %s1522_s20, %s24_s20   ;;  %s1474_s19 = sphi %s1520_s19, %s1869_s19   ;;  %s1470_s18 = sphi %s1518_s18, %s1868_s18   ;;  %s1466_s17 = sphi %s1516_s17, %s1867_s17   ;;  %s1462_s16 = sphi %s1514_s16, %s1871_s16   ;;  %s1458_s15 = sphi %s1512_s15, %s1870_s15  }
   0xd   : > { %1853 = sst [smem:[#allocation16_spill]] %s1474_s19  ;;  %s1152_s22 = sadd.s32 4294967294, %s1478_s20  }
   0xe   : > { %1854 = sst [smem:[#allocation17_spill]] %s1478_s20  ;;  %s36_s23 = sadd.s32 1, %s1474_s19 }
   0xf   : > { %s66_s24 = sadd.s32 1, %s1466_s17  ;;  %p38_p0 = scmp.ge.s32.totalorder %s36_s23, 2 }
  0x10   : > { %p73_p1 = scmp.ne.s32.totalorder %s1466_s17, %s1462_s16  ;;  %p74_p2 = scmp.eq.s32.totalorder %s1478_s20, 0 }
  0x11   : > { %p79_p3 = scmp.ne.s32.totalorder %s1462_s16, %s1458_s15  ;;  %s1873_s23 = smov (%p38_p0, %s36_s23), 0 }
  0x12   : > { %1855 = sst [smem:[#allocation18_spill]] %s1873_s23  ;;  %p1555_p4 = por %p74_p2, %p73_p1 }
  0x13   : > { %p161_p5 = scmp.eq.s32.totalorder %s1543_s21, 1  ;;  %s61_s26 = ssub.s32 %s1474_s19, %s1873_s23 }
  0x14   : > { %p167_p6 = scmp.eq.s32.totalorder %s1152_s22, 1  ;;  %p64_p7 = scmp.eq.s32.totalorder %s61_s26, 0 }
  0x15   : > { %p1562_p8 = por %p161_p5, %p73_p1  ;;  %p1155_p10 = scmp.ge.s32.totalorder %s1478_s20, 2 }
  0x16   : > { %p1569_p9 = por %p167_p6, %p79_p3  ;;  %p1210_p11 = scmp.lt.s32.totalorder %s1478_s20, 2 }
  0x17   : > { %s1574_s29 = scalar_select %p64_p7, %s1466_s17, %s66_s24  }
  0x18   : > { %s201_s30 = sand.u32 1, %s1478_s20   ;;  %s1580_s5 = sand.u32 1, %s1466_s17  }
  0x19   : > { %1859 = sst [smem:[#allocation19_spill]] %s1574_s29  ;;  %s1174_s6 = smul.u32 24, %s1580_s5 }
  0x1a   : > { %s1175_s7 = smul.u32 24, %s1474_s19  ;;  %p1586_p12 = pnand %p1210_p11, %p1555_p4 }
  0x1b   : > { %s1861_s1 = sld [smem:[#allocation21_spill]]  ;;  %s205_s12 = scalar_lea.vmem [#allocation5], %s1174_s6 }
  0x1c   : > { %s216_s13 = sshll.u32 %s205_s12, 4  ;;  %s202_s22 = scalar_lea.sflag [#allocation6], %s201_s30  ;;  %s217_s13 = int_to_ptr.vmem [resolvable:$true] %s216_s13 }
  0x1d   : > { %p80_p13 = scmp.eq.s32.totalorder %s1543_s21, 0  ;;  %p1153_p0 = scmp.ge.s32.totalorder %s1478_s20, 1 }
  0x1e   : > { %p174_p1 = scmp.lt.s32.totalorder %s1478_s20, 3  ;;  %s1863_s0 = sld [smem:[#allocation20_spill]] }
  0x1f   : > { %p1603_p2 = por %p80_p13, %p79_p3  ;;  %s1480_s30 = smov [#allocation2]  }
  0x20   : > { %p1610_p4 = pnand %p1153_p0, %p174_p1  ;;  %s187_s9 = sshll.u32 %s1480_s30, 4  ;;  %s188_s9 = int_to_ptr.vmem [resolvable:$true] %s187_s9 }
  0x21   : > { %s212_s11 = scalar_lea.hbm %s1861_s1, %s1175_s7  ;;  %s1157_s10 = sshll.u32 %s1580_s5, 3 }
  0x22   : > { %s214_s14 = sshll.u32 %s212_s11, 4  ;;  %p1191_p5 = pneg %p1610_p4  ;;  %s215_s14 = int_to_ptr.hbm [resolvable:$true] %s214_s14 }
  0x23   : > { %1198 = dma.hbm_to_vmem [thread:$0]  (!%p1586_p12), %s215_s14, 384, %s217_s13, %s202_s22  }
  0x24   : > { %s185_s6 = sshll.u32 %s1863_s0, 4  ;;  %p1192_p3 = pnand %p1191_p5, %p80_p13  ;;  %s186_s6 = int_to_ptr.hbm [resolvable:$true] %s185_s6 }
  0x25   : > { %s1158_s11 = sshll.u32 %s1474_s19, 3  ;;  %s1481_s25 = smov 128  }
  0x26   : > { %s232_s14 = scalar_lea.hbm %s1842_s2, %s1158_s11  ;;  %s1482_s26 = smov 8  }
  0x27   : > { %1194 = dma.hbm_to_vmem [thread:$0]  (!%p1192_p3), %s186_s6, 256, %s188_s9, [#allocation3], %s1481_s25, %s1481_s25, %s1482_s26  }
  0x28   : > { %s234_s0 = sshll.u32 %s232_s14, 4  ;;  %s227_s1 = scalar_lea.vmem [#allocation7], %s1157_s10  ;;  %s235_s0 = int_to_ptr.hbm [resolvable:$true] %s234_s0 }
  0x29   : > { %s236_s23 = sshll.u32 %s227_s1, 4  ;;  %s252_s19 = scalar_lea.hbm %s1843_s3, %s1158_s11  ;;  %s237_s23 = int_to_ptr.vmem [resolvable:$true] %s236_s23 }
  0x2a   : > { %1201 = dma.hbm_to_vmem [thread:$0]  (!%p1586_p12), %s235_s0, 128, %s237_s23, %s202_s22  }
  0x2b   : > { %s247_s17 = scalar_lea.vmem [#allocation8], %s1157_s10  ;;  %s254_s12 = sshll.u32 %s252_s19, 4  ;;  %s255_s12 = int_to_ptr.hbm [resolvable:$true] %s254_s12 }
  0x2c   : > { %s256_s20 = sshll.u32 %s247_s17, 4  ;;  %s244_s13 = scalar_lea.sflag [#allocation9], %s1580_s5  ;;  %s257_s20 = int_to_ptr.vmem [resolvable:$true] %s256_s20 }
  0x2d   : > { %1204 = dma.hbm_to_vmem [thread:$0]  (!%p1586_p12), %s255_s12, 128, %s257_s20, %s244_s13  }
  0x2e   : > { %265 = sbr.rel (%p1610_p4) target bundleno = 410 (0x19a), region = 36 }
  0x33   : > { %1441 = dma.done.wait (%p80_p13), [#allocation3], 256  }
  0x34   : > { %1443 = vsyncadd (%p80_p13), [#allocation3], 4294967040  ;;  %s272_s0 = sand.u32 1, %s1543_s21   ;;  %s1639_s1 = sand.u32 1, %s1462_s16  }
  0x35   : > { %s1176_s17 = smul.u32 24, %s1639_s1  ;;  %s273_s19 = scalar_lea.sflag [#allocation6], %s272_s0 }
  0x37   : > { %s276_s23 = scalar_lea.vmem [#allocation5], %s1176_s17 }
  0x38   : > { %1445 = dma.done.wait (%p1603_p2), %s273_s19, 512  }
  0x39   : > { %1447 = vsyncadd (%p1603_p2), %s273_s19, 4294966784  ;;  %s1163_s20 = sshll.u32 %s1639_s1, 3  ;;  %s293_s5 = scalar_lea.sflag [#allocation9], %s1639_s1 }
  0x3a   : > { %s286_s29 = scalar_lea.vmem [#allocation7], %s1163_s20  ;;  %s296_s8 = scalar_lea.vmem [#allocation8], %s1163_s20 }
  0x3b   : > { %1449 = dma.done.wait (%p1603_p2), %s293_s5, 128  }
  0x3c   : > { %1451 = vsyncadd (%p1603_p2), %s293_s5, 4294967168  ;;  %v337_v0 = vld [vmem:[%s286_s29] sm:$0xff]  ;;  %s1483_s21 = smov 1   ;;  %s1484_s22 = smov 127   ;;  %v1655_v3 = vld [vmem:[%s276_s23 + $0x8] sm:$0xff]  ;;  %vm367_vm0 = vcmask 195584   ;;  %v347_v10 = vlaneseq }
  0x3d   : > { %v334_v1 = vld [vmem:[%s276_s23] sm:$0xff]  ;;  %339 = vrot.lane.b32.xlu1 %v337_v0, %s1483_s21  ;;  %v1652_v2 = vld [vmem:[%s276_s23 + $0x10] sm:$0xff]  ;;  %v1709_v47 = vand.u32 4294901760, %v1655_v3  ;;  %s1177_s24 = smul.u32 48, %s1639_s1  ;;  %s1408_s0 = scalar_lea.hbm %s1844_s4, 96 }
  0x3e   : > { %353 = vrot.lane.b32.xlu0 %v334_v1, %s1484_s22  ;;  %357 = vrot.lane.b32.xlu2 %v1652_v2, %s1484_s22  ;;  %v338_v4 = vld [vmem:[%s296_s8] sm:$0xff]  ;;  %v365_v5 = vld [vmem:[#allocation2] sm:$0xff]  ;;  %v366_v6 = vld [vmem:[#allocation2 + $0x8] sm:$0xff]  ;;  %v1664_v14 = vand.u32 4294901760, %v334_v1  ;;  %v348_v16 = vand.u32 127, %v347_v10  ;;  %v1720_v55 = vand.u32 4294901760, %v1652_v2 }
  0x3f   : > { %v369_v7 = vsel %vm367_vm0, %v365_v5, 0  ;;  %v372_v8 = vsel %vm367_vm0, %v366_v6, 0  ;;  %v633_v53 = vsub.f32 %v1655_v3, %v1709_v47  ;;  %s1793_s6 = scalar_lea.vmem [#allocation10], %s1177_s24  ;;  %s1178_s7 = smul.u32 48, %s1470_s18 }
  0x40   : > { %v1660_v9 = vand.u32 4294901760, %v369_v7  ;;  %v1662_v11 = vand.u32 4294901760, %v372_v8  ;;  %v430_v20 = vsub.f32 %v334_v1, %v1664_v14  ;;  %vm349_vm1 = vcmp.lt.s32.totalorder %v348_v16, 1  ;;  %s1004_s14 = sshll.u32 %s1793_s6, 4  ;;  %s990_s18 = scalar_lea.sflag [#allocation4], %s1639_s1  ;;  %s1005_s14 = int_to_ptr.vmem [resolvable:$true] %s1004_s14 }
  0x41   : > { %vm361_vm2 = vcmp.lt.s32.totalorder %v348_v16, 127  ;;  %v634_v58 = vand.u32 4294901760, %v633_v53  ;;  %v836_v62 = vsub.f32 %v1652_v2, %v1720_v55  ;;  %s1003_s11 = scalar_lea.hbm %s1844_s4, %s1178_s7 }
  0x42   : > { %v1667_v15 = vsub.f32 %v369_v7, %v1660_v9  ;;  %v1670_v17 = vsub.f32 %v372_v8, %v1662_v11  ;;  %v431_v27 = vand.u32 4294901760, %v430_v20  ;;  %s1006_s25 = sshll.u32 %s1003_s11, 4  ;;  %s1007_s25 = int_to_ptr.hbm [resolvable:$true] %s1006_s25 }
  0x43   : > { %v635_v0 = vsub.f32 %v633_v53, %v634_v58  ;;  %s1402_s26 = sshra.s32 %s1007_s25, 4  ;;  %s1403_s26 = int_to_ptr.hbm [resolvable:$true] %s1402_s26 }
  0x44   : > { %v1673_v19 = vand.u32 4294901760, %v1667_v15  ;;  %v1677_v21 = vand.u32 4294901760, %v1670_v17  ;;  %v432_v35 = vsub.f32 %v430_v20, %v431_v27  ;;  %s1404_s30 = scalar_lea.hbm %s1403_s26, 48  ;;  %p1409_p12 = scmp.lt.s32.totalorder %s1403_s26, %s1844_s4 }
  0x45   : > { %341 = vrot.lane.b32.xlu1 %v334_v1, %s1483_s21  ;;  %v636_v6 = vand.u32 4294901760, %v635_v0  ;;  %p1405_p6 = scmp.ne.s32.totalorder %s1403_s26, %s1404_s30  ;;  %p1410_p13 = scmp.lt.s32.totalorder %s1408_s0, %s1404_s30 }
  0x46   : > { %355 = vrot.lane.b32.xlu0 %v1655_v3, %s1484_s22  ;;  %343 = vrot.lane.b32.xlu2 %v1655_v3, %s1483_s21  ;;  %v396_v26 = vsub.f32 %v1667_v15, %v1673_v19  ;;  %v404_v30 = vsub.f32 %v1670_v17, %v1677_v21  ;;  %v433_v43 = vand.u32 4294901760, %v432_v35 }
  0x47   : > { %p1406_p7 = pnand %p1405_p6, %p1562_p8  ;;  %p1411_p0 = por %p1410_p13, %p1409_p12 }
  0x48   : > { %v1694_v34 = vand.u32 4294901760, %v396_v26  ;;  %v1697_v36 = vand.u32 4294901760, %v404_v30 }
  0x49   : > { %p1407_p11 = pneg %p1406_p7 }
  0x4b   : > { %p1412_p1 = pnand %p1411_p0, %p1407_p11 }
  0x4d   : > { %345 = vrot.lane.b32.xlu1 %v1652_v2, %s1483_s21  ;;  %v837_v2 = vand.u32 4294901760, %v836_v62 }
  0x4e   : > { %359 = vrot.lane.b32.xlu0 %v338_v4, %s1484_s22 }
  0x98   : > { %v358_v18 = vpop.permute.xlu2 %357 }
  0xa0   : > { %v344_v38 = vpop.permute.xlu2 %343 }
  0xaf   : > { %v340_v12 = vpop.permute.xlu1 %339 }
  0xb0   : > { %v354_v13 = vpop.permute.xlu0 %353 }
  0xb7   : > { %v342_v22 = vpop.permute.xlu1 %341 }
  0xb8   : > { %v356_v23 = vpop.permute.xlu0 %355  ;;  %v352_v24 = vsel %vm349_vm1, %v340_v12, %v342_v22  ;;  %v351_v44 = vsel %vm349_vm1, %v342_v22, %v344_v38  ;;  %v838_v12 = vsub.f32 %v836_v62, %v837_v2 }
  0xb9   : > { %v364_v25 = vsel %vm361_vm2, %v354_v13, %v356_v23  ;;  %v1683_v28 = vand.u32 4294901760, %v352_v24  ;;  %v363_v33 = vsel %vm361_vm2, %v356_v23, %v358_v18  ;;  %v1712_v51 = vand.u32 4294901760, %v351_v44 }
  0xba   : > { %v1685_v29 = vand.u32 4294901760, %v364_v25  ;;  %v1700_v40 = vand.u32 4294901760, %v363_v33 }
  0xbb   : > { %v436_v31 = vsub.f32 %v352_v24, %v1683_v28  ;;  %v639_v59 = vsub.f32 %v351_v44, %v1712_v51 }
  0xbc   : > { %v424_v32 = vsub.f32 %v364_v25, %v1685_v29  ;;  %388 = vmatpush.msra.mxu0 %v1685_v29  ;;  %1168 = vmatpush.msra.mxu2 %v1685_v29  ;;  %v627_v50 = vsub.f32 %v363_v33, %v1700_v40 }
  0xbd   : > { %v437_v39 = vand.u32 4294901760, %v436_v31  ;;  %v640_v4 = vand.u32 4294901760, %v639_v59 }
  0xbe   : > { %390 = vmatpush.msra.mxu0 %v1664_v14  ;;  %v425_v37 = vand.u32 4294901760, %v424_v32  ;;  %1169 = vmatpush.msra.mxu2 %v1664_v14  ;;  %v628_v57 = vand.u32 4294901760, %v627_v50 }
  0xbf   : > { %v438_v48 = vsub.f32 %v436_v31, %v437_v39  ;;  %v346_v49 = vpop.permute.xlu1 %345  ;;  %v641_v8 = vsub.f32 %v639_v59, %v640_v4 }
  0xc0   : > { %392 = vmatpush.msra.mxu0 %v1683_v28  ;;  %v360_v41 = vpop.permute.xlu0 %359  ;;  %v426_v42 = vsub.f32 %v424_v32, %v425_v37  ;;  %1170 = vmatpush.msra.mxu2 %v1683_v28  ;;  %v350_v54 = vsel %vm349_vm1, %v344_v38, %v346_v49  ;;  %v629_v63 = vsub.f32 %v627_v50, %v628_v57 }
  0xc1   : > { %398 = vmatmul.f32.vlgmr.msra.gmra.mxu0 %v1694_v34  ;;  %v362_v45 = vsel %vm361_vm2, %v358_v18, %v360_v41  ;;  %406 = vmatmul.f32.vlgmr.msra.gmra.mxu2 %v1697_v36  ;;  %v439_v56 = vand.u32 4294901760, %v438_v48  ;;  %v1727_v61 = vand.u32 4294901760, %v350_v54  ;;  %v642_v13 = vand.u32 4294901760, %v641_v8 }
  0xc2   : > { %531 = vmatpush.msrb.mxu0 %v425_v37  ;;  %v427_v46 = vand.u32 4294901760, %v426_v42  ;;  %465 = vmatpush.msrb.mxu2 %v424_v32  ;;  %v1714_v52 = vand.u32 4294901760, %v362_v45  ;;  %v630_v5 = vand.u32 4294901760, %v629_v63  ;;  %v839_v18 = vand.u32 4294901760, %v838_v12 }
  0xc3   : > { %v842_v3 = vsub.f32 %v350_v54, %v1727_v61 }
  0xc4   : > { %535 = vmatpush.msrb.mxu0 %v431_v27  ;;  %428 = vmatpush.msra.mxu1 %v427_v46  ;;  %v1725_v60 = vsub.f32 %v362_v45, %v1714_v52 }
  0xc5   : > { %468 = vmatpush.msrb.mxu2 %v430_v20  ;;  %1171 = vmatpush.msra.mxu3 %v427_v46  ;;  %v843_v10 = vand.u32 4294901760, %v842_v3 }
  0xc6   : > { %539 = vmatpush.msrb.mxu0 %v437_v39  ;;  %434 = vmatpush.msra.mxu1 %v433_v43  ;;  %v831_v1 = vand.u32 4294901760, %v1725_v60 }
  0xc7   : > { %471 = vmatpush.msrb.mxu2 %v436_v31  ;;  %1172 = vmatpush.msra.mxu3 %v433_v43  ;;  %v844_v16 = vsub.f32 %v842_v3, %v843_v10 }
  0xc8   : > { %668 = vmatpush.msra.mxu0 %v627_v50  ;;  %440 = vmatpush.msra.mxu1 %v439_v56  ;;  %v832_v7 = vsub.f32 %v1725_v60, %v831_v1 }
  0xc9   : > { %591 = vmatpush.msra.mxu2 %v1700_v40  ;;  %1173 = vmatpush.msra.mxu3 %v439_v56  ;;  %v845_v20 = vand.u32 4294901760, %v844_v16 }
  0xca   : > { %671 = vmatpush.msra.mxu0 %v633_v53  ;;  %442 = vmatmul.f32.vlgmr.msra.gmra.mxu1 %v1660_v9 }
  0xcb   : > { %593 = vmatpush.msra.mxu2 %v1709_v47  ;;  %446 = vmatmul.f32.vlgmr.msra.gmra.mxu3 %v1662_v11 }
  0xcc   : > { %474 = vmatmul.f32.vlgmr.msrb.gmra.mxu2 %v1667_v15  ;;  %497 = vmatpush.msrb.mxu3 %v1685_v29 }
  0xcd   : > { %541 = vmatmul.f32.vlgmr.msrb.gmra.mxu0 %v1660_v9  ;;  %563 = vmatpush.msrb.mxu1 %v1685_v29 }
  0xce   : > { %595 = vmatpush.msra.mxu2 %v1712_v51  ;;  %674 = vmatpush.msra.mxu0 %v639_v59 }
  0xcf   : > { %499 = vmatpush.msrb.mxu3 %v1664_v14  ;;  %565 = vmatpush.msrb.mxu1 %v1664_v14  ;;  %v833_v14 = vand.u32 4294901760, %v832_v7 }
  0xd0   : > { %734 = vmatpush.msrb.mxu2 %v628_v57  ;;  %794 = vmatpush.msrb.mxu0 %v1714_v52 }
  0xd1   : > { %501 = vmatpush.msrb.mxu3 %v1683_v28  ;;  %567 = vmatpush.msrb.mxu1 %v1683_v28 }
  0xd2   : > { %738 = vmatpush.msrb.mxu2 %v634_v58  ;;  %569 = vmatmul.f32.vlgmr.msrb.gmra.mxu1 %v1660_v9 }
  0xd3   : > { %631 = vmatpush.msra.mxu3 %v630_v5  ;;  %700 = vmatpush.msra.mxu1 %v1700_v40 }
  0xd4   : > { %505 = vmatmul.f32.vlgmr.msrb.gmra.mxu3 %v1673_v19  ;;  %742 = vmatpush.msrb.mxu2 %v640_v4 }
  0xd5   : > { %637 = vmatpush.msra.mxu3 %v636_v6  ;;  %702 = vmatpush.msra.mxu1 %v1709_v47 }
  0xd6   : > { %479 = vmatmul.f32.gmra.mxu2 %v1670_v17  ;;  %545 = vmatmul.f32.gmra.mxu0 %v1662_v11 }
  0xd7   : > { %643 = vmatpush.msra.mxu3 %v642_v13  ;;  %704 = vmatpush.msra.mxu1 %v1712_v51 }
  0xd8   : > { %796 = vmatpush.msrb.mxu0 %v1720_v55 }
  0xd9   : > { %766 = vmatpush.msrb.mxu3 %v1700_v40  ;;  %834 = vmatpush.msrb.mxu1 %v833_v14 }
  0xda   : > { %798 = vmatpush.msrb.mxu0 %v1727_v61  ;;  %573 = vmatmul.f32.gmra.mxu1 %v1662_v11 }
  0xdb   : > { %768 = vmatpush.msrb.mxu3 %v1709_v47  ;;  %840 = vmatpush.msrb.mxu1 %v839_v18 }
  0xdc   : > { %511 = vmatmul.f32.gmra.mxu3 %v1677_v21 }
  0xdd   : > { %770 = vmatpush.msrb.mxu3 %v1712_v51  ;;  %846 = vmatpush.msrb.mxu1 %v845_v20 }
  0xde   : > { %601 = vmatmul.f32.vlgmr.msra.gmra.mxu2 %v1694_v34  ;;  %677 = vmatmul.f32.vlgmr.msra.gmra.mxu0 %v1667_v15 }
  0xdf   : > { %871 = vmatpush.msra.mxu2 %v1725_v60  ;;  %937 = vmatpush.msra.mxu0 %v831_v1 }
  0xe1   : > { %874 = vmatpush.msra.mxu2 %v836_v62  ;;  %941 = vmatpush.msra.mxu0 %v837_v2 }
  0xe2   : > { %708 = vmatmul.f32.vlgmr.msra.gmra.mxu1 %v1673_v19 }
  0xe3   : > { %877 = vmatpush.msra.mxu2 %v842_v3  ;;  %945 = vmatpush.msra.mxu0 %v843_v10 }
  0xe4   : > { %645 = vmatmul.f32.vlgmr.msra.gmra.mxu3 %v1660_v9  ;;  %969 = vmatpush.msra.mxu1 %v1714_v52 }
  0xe5   : > { %903 = vmatpush.msra.mxu3 %v1714_v52 }
  0xe6   : > { %609 = vmatmul.f32.gmra.mxu2 %v1697_v36  ;;  %682 = vmatmul.f32.gmra.mxu0 %v1670_v17 }
  0xe7   : > { %905 = vmatpush.msra.mxu3 %v1720_v55  ;;  %971 = vmatpush.msra.mxu1 %v1720_v55 }
  0xe9   : > { %907 = vmatpush.msra.mxu3 %v1727_v61  ;;  %973 = vmatpush.msra.mxu1 %v1727_v61 }
  0xea   : > { %714 = vmatmul.f32.gmra.mxu1 %v1677_v21 }
  0xec   : > { %649 = vmatmul.f32.gmra.mxu3 %v1662_v11 }
  0xee   : > { %744 = vmatmul.f32.vlgmr.msrb.gmra.mxu2 %v1660_v9  ;;  %804 = vmatmul.f32.vlgmr.msrb.gmra.mxu0 %v1694_v34 }
  0xf2   : > { %848 = vmatmul.f32.vlgmr.msrb.gmra.mxu1 %v1660_v9 }
  0xf4   : > { %772 = vmatmul.f32.vlgmr.msrb.gmra.mxu3 %v1660_v9 }
  0xf6   : > { %748 = vmatmul.f32.gmra.mxu2 %v1662_v11  ;;  %812 = vmatmul.f32.gmra.mxu0 %v1697_v36 }
  0xfa   : > { %852 = vmatmul.f32.gmra.mxu1 %v1662_v11 }
  0xfc   : > { %776 = vmatmul.f32.gmra.mxu3 %v1662_v11 }
  0xfe   : > { %880 = vmatmul.f32.vlgmr.msra.gmra.mxu2 %v1667_v15  ;;  %947 = vmatmul.f32.vlgmr.msra.gmra.mxu0 %v1660_v9 }
 0x102   : > { %975 = vmatmul.f32.vlgmr.msra.gmra.mxu1 %v1660_v9 }
 0x104   : > { %911 = vmatmul.f32.vlgmr.msra.gmra.mxu3 %v1673_v19 }
 0x106   : > { %885 = vmatmul.f32.gmra.mxu2 %v1670_v17  ;;  %951 = vmatmul.f32.gmra.mxu0 %v1662_v11 }
 0x10a   : > { %979 = vmatmul.f32.gmra.mxu1 %v1662_v11 }
 0x10c   : > { %917 = vmatmul.f32.gmra.mxu3 %v1677_v21 }
 0x13e   : > { %v399_v22 = vpop.f32.mrf.mxu0 }
 0x144   : > { %v407_v23 = vpop.f32.mrf.mxu2 }
 0x147   : > { %v443_v15 = vpop.f32.mrf.mxu1 }
 0x148   : > { %v444_v27 = vadd.f32 %v443_v15, %v399_v22 }
 0x14a   : > { %v542_v24 = vpop.f32.mrf.mxu0 }
 0x14e   : > { %v447_v25 = vpop.f32.mrf.mxu3 }
 0x14f   : > { %v475_v26 = vpop.f32.mrf.mxu2  ;;  %v570_v28 = vpop.f32.mrf.mxu1  ;;  %v448_v32 = vadd.f32 %v447_v25, %v407_v23 }
 0x150   : > { %v476_v29 = vadd.f32 %v475_v26, %v444_v27 }
 0x153   : > { %v546_v19 = vpop.f32.mrf.mxu0 }
 0x157   : > { %v506_v17 = vpop.f32.mrf.mxu3  ;;  %v574_v21 = vpop.f32.mrf.mxu1 }
 0x158   : > { %v507_v30 = vadd.f32 %v506_v17, %v476_v29 }
 0x159   : > { %v480_v9 = vpop.f32.mrf.mxu2 }
 0x15a   : > { %v543_v31 = vadd.f32 %v542_v24, %v507_v30  ;;  %v481_v34 = vadd.f32 %v480_v9, %v448_v32 }
 0x15b   : > { %v678_v11 = vpop.f32.mrf.mxu0 }
 0x15c   : > { %v571_v33 = vadd.f32 %v570_v28, %v543_v31 }
 0x15e   : > { %983 = vst [vmem:[%s1793_s6] sm:$0xff] %v571_v33 }
 0x15f   : > { %v512_v35 = vpop.f32.mrf.mxu3  ;;  %v709_v40 = vpop.f32.mrf.mxu1 }
 0x160   : > { %v513_v36 = vadd.f32 %v512_v35, %v481_v34 }
 0x161   : > { %v602_v37 = vpop.f32.mrf.mxu2 }
 0x162   : > { %v547_v38 = vadd.f32 %v546_v19, %v513_v36 }
 0x163   : > { %v683_v42 = vpop.f32.mrf.mxu0 }
 0x164   : > { %v575_v39 = vadd.f32 %v574_v21, %v547_v38 }
 0x166   : > { %986 = vst [vmem:[%s1793_s6 + $0x18] sm:$0xff] %v575_v39 }
 0x167   : > { %v646_v41 = vpop.f32.mrf.mxu3  ;;  %v715_v44 = vpop.f32.mrf.mxu1 }
 0x168   : > { %v647_v45 = vadd.f32 %v646_v41, %v602_v37 }
 0x169   : > { %v610_v43 = vpop.f32.mrf.mxu2 }
 0x16a   : > { %v679_v47 = vadd.f32 %v678_v11, %v647_v45 }
 0x16b   : > { %v805_v49 = vpop.f32.mrf.mxu0 }
 0x16c   : > { %v710_v50 = vadd.f32 %v709_v40, %v679_v47 }
 0x16f   : > { %v650_v46 = vpop.f32.mrf.mxu3  ;;  %v849_v52 = vpop.f32.mrf.mxu1 }
 0x170   : > { %v651_v51 = vadd.f32 %v650_v46, %v610_v43  ;;  %v850_v1 = vadd.f32 %v849_v52, %v805_v49 }
 0x171   : > { %v745_v48 = vpop.f32.mrf.mxu2 }
 0x172   : > { %v746_v53 = vadd.f32 %v745_v48, %v710_v50  ;;  %v684_v55 = vadd.f32 %v683_v42, %v651_v51 }
 0x173   : > { %v813_v58 = vpop.f32.mrf.mxu0 }
 0x174   : > { %v716_v59 = vadd.f32 %v715_v44, %v684_v55 }
 0x177   : > { %v773_v54 = vpop.f32.mrf.mxu3  ;;  %v853_v62 = vpop.f32.mrf.mxu1 }
 0x178   : > { %v774_v57 = vadd.f32 %v773_v54, %v746_v53  ;;  %v854_v10 = vadd.f32 %v853_v62, %v813_v58 }
 0x179   : > { %v749_v56 = vpop.f32.mrf.mxu2 }
 0x17a   : > { %984 = vst [vmem:[%s1793_s6 + $0x8] sm:$0xff] %v774_v57  ;;  %v750_v60 = vadd.f32 %v749_v56, %v716_v59 }
 0x17b   : > { %v948_v3 = vpop.f32.mrf.mxu0 }
 0x17f   : > { %v777_v61 = vpop.f32.mrf.mxu3  ;;  %v976_v5 = vpop.f32.mrf.mxu1 }
 0x180   : > { %v778_v63 = vadd.f32 %v777_v61, %v750_v60 }
 0x181   : > { %v881_v0 = vpop.f32.mrf.mxu2 }
 0x182   : > { %987 = vst [vmem:[%s1793_s6 + $0x20] sm:$0xff] %v778_v63  ;;  %v882_v4 = vadd.f32 %v881_v0, %v850_v1 }
 0x183   : > { %v952_v16 = vpop.f32.mrf.mxu0 }
 0x187   : > { %v912_v2 = vpop.f32.mrf.mxu3  ;;  %v980_v20 = vpop.f32.mrf.mxu1 }
 0x188   : > { %v913_v6 = vadd.f32 %v912_v2, %v882_v4 }
 0x189   : > { %v886_v8 = vpop.f32.mrf.mxu2 }
 0x18a   : > { %v949_v7 = vadd.f32 %v948_v3, %v913_v6  ;;  %v887_v13 = vadd.f32 %v886_v8, %v854_v10 }
 0x18c   : > { %v977_v12 = vadd.f32 %v976_v5, %v949_v7 }
 0x18e   : > { %985 = vst [vmem:[%s1793_s6 + $0x10] sm:$0xff] %v977_v12 }
 0x18f   : > { %v918_v14 = vpop.f32.mrf.mxu3 }
 0x190   : > { %v919_v18 = vadd.f32 %v918_v14, %v887_v13 }
 0x192   : > { %v953_v22 = vadd.f32 %v952_v16, %v919_v18 }
 0x194   : > { %v981_v23 = vadd.f32 %v980_v20, %v953_v22 }
 0x196   : > { %988 = vst [vmem:[%s1793_s6 + $0x28] sm:$0xff] %v981_v23 }
 0x197   : > { %1415 = shalt.err (!%p1412_p1)
}
 0x198   : > { %s1485_s1 = smov 384   ;;  %s1486_s23 = smov 24  }
 0x199   : > { %1189 = dma.vmem_to_hbm [thread:$0]  (%p1562_p8), %s1005_s14, 768, %s1007_s25, %s990_s18, %s1485_s1, %s1485_s1, %s1486_s23  }
 0x19a PF: > { %s1865_s20 = sld [smem:[#allocation17_spill]]  ;;  %s1021_s29 = sand.u32 1, %s1458_s15  }
 0x19b   : > { %p1206_p2 = pnand %p1155_p10, %p1569_p9  ;;  %s1022_s5 = scalar_lea.sflag [#allocation4], %s1021_s29 }
 0x19d   : > { %p1207_p4 = pneg %p1206_p2 }
 0x19f   : > { %1453 = dma.done.wait (%p1207_p4), %s1022_s5, 768  }
 0x1a0   : > { %1455 = vsyncadd (%p1207_p4), %s1022_s5, 4294966528  ;;  %s24_s20 = sadd.s32 1, %s1865_s20   ;;  %s1866_s8 = sld [smem:[#allocation15_spill]] }
 0x1a1   : > { %p21_p5 = scmp.ge.s32.totalorder %s24_s20, 4   ;;  %s1867_s17 = sld [smem:[#allocation19_spill]] }
 0x1a2   : > { %s1868_s18 = sld [smem:[#allocation16_spill]]  ;;  %s1870_s15 = smov %s1462_s16 }
 0x1a3   : > { %s1869_s19 = sld [smem:[#allocation18_spill]]  ;;  %23 = sbr.rel (!%p21_p5) target bundleno = 12 (0xc), region = 110 }
 0x1a6   : > { %s1871_s16 = smov %s1866_s8 }
 0x1a8   :  { %1028 = vsyncpa [#allocation3], 1 }
 0x1a9   :  { %1030 = vsyncpa [#allocation3 + $0x1], 1 }
 0x1aa   :  { %1031 = vsyncpa [#allocation6], 1 }
 0x1ab   :  { %1033 = vsyncpa [#allocation6 + $0x1], 1 }
 0x1ac   :  { %1034 = vsyncpa [#allocation9], 1 }
 0x1ad   :  { %1036 = vsyncpa [#allocation9 + $0x1], 1 }
 0x1ae   :  { %1037 = vsyncpa [#allocation4], 1 }
 0x1af   :  { %1039 = vsyncpa [#allocation4 + $0x1], 1 }

</bundles_post_ra>
